<compile_context>
chip_gen: v6e
topology: v6e:2x2x1
jax: 0.10.0
libtpu: 0.0.40
codegen_flags: <defaults>
</compile_context>

<pallas_src>
import jax
import jax.numpy as jnp
from jax.experimental import pallas as pl
from jax.experimental.pallas import tpu as pltpu


def _round_up(x, m):
    return ((x + m - 1) // m) * m


def _make_kernel(aggregation_type, num_states, num_linear, use_bf16_matmul):
    """Fused streamed-aggregation + MLP kernel (all config static via closure)."""
    inv_l = 1.0 / float(num_states)

    def kernel(*refs):
        x_refs = refs[:num_states]
        o_ref = refs[-1]

        # --- streamed aggregation over the hidden states ---------------------
        # Only the accumulator + one incoming (tb, D) tile are live at a time,
        # independent of L, so the vreg file never spills.
        x = x_refs[0][...].astype(jnp.float32)
        for r in x_refs[1:]:
            nxt = r[...].astype(jnp.float32)
            if aggregation_type == "mean":
                x = x + nxt
            else:  # "max"
                x = jnp.maximum(x, nxt)
        if aggregation_type == "mean" and num_states > 1:
            x = x * jnp.float32(inv_l)

        # --- MLP: (Linear + LeakyReLU(0.01)) x num_linear, statically unrolled
        if num_linear > 0:
            w_ref = refs[num_states]
            b_ref = refs[num_states + 1]
            for l in range(num_linear):
                w = w_ref[l]                                # [D, D], already [in, out]
                b = b_ref[l].astype(jnp.float32)            # [1, D]
                lhs = x.astype(jnp.bfloat16) if use_bf16_matmul else x
                x = jnp.dot(lhs, w, preferred_element_type=jnp.float32) + b
                x = jnp.where(x > 0, x, jnp.float32(0.01) * x)   # LeakyReLU(0.01)

        o_ref[...] = x.astype(o_ref.dtype)

    return kernel


def _const_spec(shape, single_buffer):
    """BlockSpec for grid-invariant (resident) parameters."""
    index_map = lambda i: (0,) * len(shape)
    if single_buffer:
        # Constant index map -> data never changes across grid steps, so one
        # VMEM buffer is enough (double-buffering it only wastes VMEM; v7x has
        # just 64 MiB per TensorCore).
        return pl.BlockSpec(shape, index_map, pipeline_mode=pl.Buffered(1))
    return pl.BlockSpec(shape, index_map)


def aggregator_forward(xs, weights, biases, *, aggregation_type,
                       batch_tile=256, use_bf16_matmul=True):
    """Pallas implementation of Aggregator.forward.

    xs:      list of [B, D] arrays (the sequence of hidden states).
    weights: list of [D, D] arrays in PyTorch nn.Linear layout (out, in).
    biases:  list of [D] arrays.
    Returns [B, D].
    """
    assert len(xs) >= 1
    B, D = xs[0].shape
    out_dtype = xs[0].dtype
    nl = len(weights)
    assert len(biases) == nl

    if aggregation_type == "last":
        states = [xs[-1]]                 # other L-1 states never touch HBM again
    elif aggregation_type in ("mean", "max"):
        states = list(xs)                 # separate inputs: no jnp.stack copy
    else:
        raise ValueError(f"unknown aggregation_type: {aggregation_type}")
    L = len(states)

    # --- batch tiling: sublane aligned, no jnp.pad (Pallas masks the last block)
    tb = min(batch_tile, _round_up(B, 8))
    if B > 8 and pl.cdiv(B, tb) < 2:
        # ensure >= 2 grid steps so the "parallel" batch axis can shard across
        # the two TensorCores of a v7x chip
        tb = _round_up(pl.cdiv(B, 2), 8)
    tb = max(8, _round_up(tb, 8))
    grid = (pl.cdiv(B, tb),)

    # --- resident MLP parameters: pre-transpose once to [in, out], bf16 for MXU
    w_dtype = jnp.bfloat16 if use_bf16_matmul else jnp.float32
    if nl > 0:
        w_stack = jnp.stack([w.T.astype(w_dtype) for w in weights], axis=0)  # [NL, D, D]
        b_stack = jnp.stack(biases, axis=0).astype(jnp.float32)[:, None, :]  # [NL, 1, D]

    kernel = _make_kernel(aggregation_type, L, nl, use_bf16_matmul)

    in_bytes = jnp.dtype(xs[0].dtype).itemsize
    out_bytes = jnp.dtype(out_dtype).itemsize
    w_bytes = jnp.dtype(w_dtype).itemsize

    def build_and_run(single_buffer_weights):
        in_specs = [pl.BlockSpec((tb, D), lambda i: (i, 0)) for _ in range(L)]
        inputs = list(states)
        w_buf = 1 if single_buffer_weights else 2
        if nl > 0:
            in_specs += [
                _const_spec((nl, D, D), single_buffer_weights),
                _const_spec((nl, 1, D), single_buffer_weights),
            ]
            inputs += [w_stack, b_stack]

        # VMEM budget from the actual buffers (double-buffered streaming inputs
        # and output, single/double-buffered resident params) plus headroom.
        vmem_bytes = (L * 2 * tb * D * in_bytes
                      + 2 * tb * D * out_bytes
                      + (nl * D * D * w_bytes + nl * D * 4) * w_buf)
        vmem_limit = int(min(96 * 2 ** 20, max(8 * 2 ** 20, 2 * vmem_bytes)))

        out = pl.pallas_call(
            kernel,
            out_shape=jax.ShapeDtypeStruct((B, D), out_dtype),
            grid_spec=pltpu.PrefetchScalarGridSpec(
                num_scalar_prefetch=0,
                grid=grid,
                in_specs=in_specs,
                out_specs=pl.BlockSpec((tb, D), lambda i: (i, 0)),
            ),
            compiler_params=pltpu.CompilerParams(
                dimension_semantics=("parallel",),
                vmem_limit_bytes=vmem_limit,
            ),
        )(*inputs)
        return jax.block_until_ready(out)

    if nl > 0:
        try:
            return build_and_run(True)
        except Exception:
            # pl.Buffered(1) not supported by this jax/mosaic build; fall back
            # to default double-buffered resident weights.
            return build_and_run(False)
    return build_and_run(False)


def _reference(xs, weights, biases, aggregation_type):
    """Pure-JAX reference mirroring the PyTorch forward (f32, highest precision)."""
    if aggregation_type == "last":
        x = xs[-1]
    elif aggregation_type == "mean":
        x = jnp.stack(xs, axis=1).mean(axis=1)
    elif aggregation_type == "max":
        x = jnp.stack(xs, axis=1).max(axis=1)
    else:
        raise ValueError(aggregation_type)
    for W, b in zip(weights, biases):
        x = jnp.dot(x, W.T, precision=jax.lax.Precision.HIGHEST) + b
        x = jnp.where(x > 0, x, 0.01 * x)            # LeakyReLU(0.01)
    return x


if __name__ == "__main__":
    # Small shapes consistent with the module.
    B, D = 16, 128            # batch, hidden_size (D multiple of 128 => lane-dense)
    L = 4                     # number of hidden states in xs
    num_output_layers = 3     # => 2 Linear(+LeakyReLU) layers

    key0 = jax.random.PRNGKey(0)
    keys = jax.random.split(key0, L + 2 * (num_output_layers - 1))

    xs = [jax.random.normal(keys[i], (B, D), dtype=jnp.float32) for i in range(L)]
    weights = [
        0.1 * jax.random.normal(keys[L + 2 * i], (D, D), dtype=jnp.float32)
        for i in range(num_output_layers - 1)
    ]
    biases = [
        0.1 * jax.random.normal(keys[L + 2 * i + 1], (D,), dtype=jnp.float32)
        for i in range(num_output_layers - 1)
    ]

    ok = True
    for agg in ("last", "mean", "max"):
        ref = _reference(xs, weights, biases, agg)
        # f32 matmul path: tight check; bf16-operand MXU path: relaxed (f32 accumulation).
        for use_bf16, tol in ((False, 5e-3), (True, 5e-2)):
            out = aggregator_forward(xs, weights, biases, aggregation_type=agg,
                                     use_bf16_matmul=use_bf16)
            out = jax.block_until_ready(out)
            if not jnp.allclose(out, ref, atol=tol, rtol=tol):
                ok = False
                err = float(jnp.max(jnp.abs(out - ref)))
                print(f"MISMATCH agg={agg} bf16={use_bf16}: max abs err = {err}")

    if ok:
        print("KERNEL_OK")
</pallas_src>

<mosaic_0001>
module attributes {stable_mosaic.version = 11 : i64} {
  func.func @kernel(%arg0: i32, %arg1: memref<8x128xf32, #tpu.memory_space<vmem>>, %arg2: memref<2x128x128xf32, #tpu.memory_space<vmem>>, %arg3: memref<2x1x128xf32, #tpu.memory_space<vmem>>, %arg4: memref<8x128xf32, #tpu.memory_space<vmem>>) attributes {dimension_semantics = [#tpu.dimension_semantics<parallel>], iteration_bounds = array<i64: 2>, scalar_prefetch = 0 : i64, scratch_operands = 0 : i64, tpu.core_type = #tpu.core_type<tc>, window_params = [{transform_indices = @transform_0, window_bounds = array<i64: 8, 128>}, {pipeline_mode = #tpu.pipeline_mode<synchronous>, transform_indices = @transform_1, window_bounds = array<i64: 2, 128, 128>}, {pipeline_mode = #tpu.pipeline_mode<synchronous>, transform_indices = @transform_2, window_bounds = array<i64: 2, 1, 128>}, {transform_indices = @transform_3, window_bounds = array<i64: 8, 128>}]} {
    %c0 = arith.constant 0 : index
    %c0_0 = arith.constant 0 : index
    %0 = vector.load %arg1[%c0, %c0_0] : memref<8x128xf32, #tpu.memory_space<vmem>>, vector<8x128xf32>
    %c0_1 = arith.constant 0 : index
    %c0_2 = arith.constant 0 : index
    %c0_3 = arith.constant 0 : index
    %1 = vector.load %arg2[%c0_1, %c0_2, %c0_3] : memref<2x128x128xf32, #tpu.memory_space<vmem>>, vector<1x128x128xf32>
    %2 = vector.shape_cast %1 : vector<1x128x128xf32> to vector<128x128xf32>
    %c0_4 = arith.constant 0 : index
    %c0_5 = arith.constant 0 : index
    %c0_6 = arith.constant 0 : index
    %3 = vector.load %arg3[%c0_4, %c0_5, %c0_6] : memref<2x1x128xf32, #tpu.memory_space<vmem>>, vector<1x1x128xf32>
    %4 = vector.shape_cast %3 : vector<1x1x128xf32> to vector<1x128xf32>
    %cst = arith.constant dense<0.000000e+00> : vector<8x128xf32>
    %5 = tpu.matmul %0, %2, %cst {dimension_numbers = #tpu.dot_dimension_numbers<[1], [0], [0], [1], [0, 0, 1, 1], [], []>} : vector<8x128xf32>, vector<128x128xf32>, vector<8x128xf32> -> vector<8x128xf32>
    %6 = vector.broadcast %4 : vector<1x128xf32> to vector<8x128xf32>
    %7 = arith.addf %5, %6 : vector<8x128xf32>
    %cst_7 = arith.constant 0.000000e+00 : f32
    %8 = vector.broadcast %cst_7 : f32 to vector<8x128xf32>
    %9 = arith.cmpf ogt, %7, %8 : vector<8x128xf32>
    %cst_8 = arith.constant 0.00999999977 : f32
    %10 = vector.broadcast %cst_8 : f32 to vector<8x128xf32>
    %11 = arith.mulf %10, %7 : vector<8x128xf32>
    %12 = arith.select %9, %7, %11 : vector<8x128xi1>, vector<8x128xf32>
    %c1 = arith.constant 1 : index
    %c0_9 = arith.constant 0 : index
    %c0_10 = arith.constant 0 : index
    %13 = vector.load %arg2[%c1, %c0_9, %c0_10] : memref<2x128x128xf32, #tpu.memory_space<vmem>>, vector<1x128x128xf32>
    %14 = vector.shape_cast %13 : vector<1x128x128xf32> to vector<128x128xf32>
    %c1_11 = arith.constant 1 : index
    %c0_12 = arith.constant 0 : index
    %c0_13 = arith.constant 0 : index
    %15 = vector.load %arg3[%c1_11, %c0_12, %c0_13] : memref<2x1x128xf32, #tpu.memory_space<vmem>>, vector<1x1x128xf32>
    %16 = vector.shape_cast %15 : vector<1x1x128xf32> to vector<1x128xf32>
    %cst_14 = arith.constant dense<0.000000e+00> : vector<8x128xf32>
    %17 = tpu.matmul %12, %14, %cst_14 {dimension_numbers = #tpu.dot_dimension_numbers<[1], [0], [0], [1], [0, 0, 1, 1], [], []>} : vector<8x128xf32>, vector<128x128xf32>, vector<8x128xf32> -> vector<8x128xf32>
    %18 = vector.broadcast %16 : vector<1x128xf32> to vector<8x128xf32>
    %19 = arith.addf %17, %18 : vector<8x128xf32>
    %cst_15 = arith.constant 0.000000e+00 : f32
    %20 = vector.broadcast %cst_15 : f32 to vector<8x128xf32>
    %21 = arith.cmpf ogt, %19, %20 : vector<8x128xf32>
    %cst_16 = arith.constant 0.00999999977 : f32
    %22 = vector.broadcast %cst_16 : f32 to vector<8x128xf32>
    %23 = arith.mulf %22, %19 : vector<8x128xf32>
    %24 = arith.select %21, %19, %23 : vector<8x128xi1>, vector<8x128xf32>
    %c0_17 = arith.constant 0 : index
    %c0_18 = arith.constant 0 : index
    %25 = vector.load %arg4[%c0_17, %c0_18] : memref<8x128xf32, #tpu.memory_space<vmem>>, vector<8x128xf32>
    tpu.vector_store %arg4[%c0_17, %c0_18], %24 {strides = array<i32>} : memref<8x128xf32, #tpu.memory_space<vmem>>, vector<8x128xf32>,
    return
  }
  func.func @transform_0(%arg0: i32) -> (i32, i32) {
    %c0_i32 = arith.constant 0 : i32
    %c0_i32_0 = arith.constant 0 : i32
    return %arg0, %c0_i32 : i32, i32
  }
  func.func @transform_1(%arg0: i32) -> (i32, i32, i32) {
    %c0_i32 = arith.constant 0 : i32
    %c0_i32_0 = arith.constant 0 : i32
    %c0_i32_1 = arith.constant 0 : i32
    %c0_i32_2 = arith.constant 0 : i32
    return %c0_i32, %c0_i32_0, %c0_i32_1 : i32, i32, i32
  }
  func.func @transform_2(%arg0: i32) -> (i32, i32, i32) {
    %c0_i32 = arith.constant 0 : i32
    %c0_i32_0 = arith.constant 0 : i32
    %c0_i32_1 = arith.constant 0 : i32
    %c0_i32_2 = arith.constant 0 : i32
    return %c0_i32, %c0_i32_0, %c0_i32_1 : i32, i32, i32
  }
  func.func @transform_3(%arg0: i32) -> (i32, i32) {
    %c0_i32 = arith.constant 0 : i32
    %c0_i32_0 = arith.constant 0 : i32
    return %arg0, %c0_i32 : i32, i32
  }
}

module attributes {stable_mosaic.version = 11 : i64} {
  func.func @kernel(%arg0: i32, %arg1: memref<8x128xf32, #tpu.memory_space<vmem>>, %arg2: memref<2x128x128xf32, #tpu.memory_space<vmem>>, %arg3: memref<2x1x128xf32, #tpu.memory_space<vmem>>, %arg4: memref<8x128xf32, #tpu.memory_space<vmem>>) attributes {dimension_semantics = [#tpu.dimension_semantics<parallel>], iteration_bounds = array<i64: 2>, scalar_prefetch = 0 : i64, scratch_operands = 0 : i64, tpu.core_type = #tpu.core_type<tc>, window_params = [{transform_indices = @transform_0, window_bounds = array<i64: 8, 128>}, {pipeline_mode = #tpu.pipeline_mode<synchronous>, transform_indices = @transform_1, window_bounds = array<i64: 2, 128, 128>}, {pipeline_mode = #tpu.pipeline_mode<synchronous>, transform_indices = @transform_2, window_bounds = array<i64: 2, 1, 128>}, {transform_indices = @transform_3, window_bounds = array<i64: 8, 128>}]} {
    %c0 = arith.constant 0 : index
    %c0_0 = arith.constant 0 : index
    %0 = vector.load %arg1[%c0, %c0_0] : memref<8x128xf32, #tpu.memory_space<vmem>>, vector<8x128xf32>
    %c0_1 = arith.constant 0 : index
    %c0_2 = arith.constant 0 : index
    %c0_3 = arith.constant 0 : index
    %1 = vector.load %arg2[%c0_1, %c0_2, %c0_3] : memref<2x128x128xf32, #tpu.memory_space<vmem>>, vector<1x128x128xf32>
    %2 = vector.shape_cast %1 : vector<1x128x128xf32> to vector<128x128xf32>
    %c0_4 = arith.constant 0 : index
    %c0_5 = arith.constant 0 : index
    %c0_6 = arith.constant 0 : index
    %3 = vector.load %arg3[%c0_4, %c0_5, %c0_6] : memref<2x1x128xf32, #tpu.memory_space<vmem>>, vector<1x1x128xf32>
    %4 = vector.shape_cast %3 : vector<1x1x128xf32> to vector<1x128xf32>
    %cst = arith.constant dense<0.000000e+00> : vector<8x128xf32>
    %5 = tpu.matmul %0, %2, %cst {dimension_numbers = #tpu.dot_dimension_numbers<[1], [0], [0], [1], [0, 0, 1, 1], [], []>} : vector<8x128xf32>, vector<128x128xf32>, vector<8x128xf32> -> vector<8x128xf32>
    %6 = vector.broadcast %4 : vector<1x128xf32> to vector<8x128xf32>
    %7 = arith.addf %5, %6 : vector<8x128xf32>
    %cst_7 = arith.constant 0.000000e+00 : f32
    %8 = vector.broadcast %cst_7 : f32 to vector<8x128xf32>
    %9 = arith.cmpf ogt, %7, %8 : vector<8x128xf32>
    %cst_8 = arith.constant 0.00999999977 : f32
    %10 = vector.broadcast %cst_8 : f32 to vector<8x128xf32>
    %11 = arith.mulf %10, %7 : vector<8x128xf32>
    %12 = arith.select %9, %7, %11 : vector<8x128xi1>, vector<8x128xf32>
    %c1 = arith.constant 1 : index
    %c0_9 = arith.constant 0 : index
    %c0_10 = arith.constant 0 : index
    %13 = vector.load %arg2[%c1, %c0_9, %c0_10] : memref<2x128x128xf32, #tpu.memory_space<vmem>>, vector<1x128x128xf32>
    %14 = vector.shape_cast %13 : vector<1x128x128xf32> to vector<128x128xf32>
    %c1_11 = arith.constant 1 : index
    %c0_12 = arith.constant 0 : index
    %c0_13 = arith.constant 0 : index
    %15 = vector.load %arg3[%c1_11, %c0_12, %c0_13] : memref<2x1x128xf32, #tpu.memory_space<vmem>>, vector<1x1x128xf32>
    %16 = vector.shape_cast %15 : vector<1x1x128xf32> to vector<1x128xf32>
    %cst_14 = arith.constant dense<0.000000e+00> : vector<8x128xf32>
    %17 = tpu.matmul %12, %14, %cst_14 {dimension_numbers = #tpu.dot_dimension_numbers<[1], [0], [0], [1], [0, 0, 1, 1], [], []>} : vector<8x128xf32>, vector<128x128xf32>, vector<8x128xf32> -> vector<8x128xf32>
    %18 = vector.broadcast %16 : vector<1x128xf32> to vector<8x128xf32>
    %19 = arith.addf %17, %18 : vector<8x128xf32>
    %cst_15 = arith.constant 0.000000e+00 : f32
    %20 = vector.broadcast %cst_15 : f32 to vector<8x128xf32>
    %21 = arith.cmpf ogt, %19, %20 : vector<8x128xf32>
    %cst_16 = arith.constant 0.00999999977 : f32
    %22 = vector.broadcast %cst_16 : f32 to vector<8x128xf32>
    %23 = arith.mulf %22, %19 : vector<8x128xf32>
    %24 = arith.select %21, %19, %23 : vector<8x128xi1>, vector<8x128xf32>
    %c0_17 = arith.constant 0 : index
    %c0_18 = arith.constant 0 : index
    %25 = vector.load %arg4[%c0_17, %c0_18] : memref<8x128xf32, #tpu.memory_space<vmem>>, vector<8x128xf32>
    tpu.vector_store %arg4[%c0_17, %c0_18], %24 {strides = array<i32>} : memref<8x128xf32, #tpu.memory_space<vmem>>, vector<8x128xf32>,
    return
  }
  func.func @transform_0(%arg0: i32) -> (i32, i32) {
    %c0_i32 = arith.constant 0 : i32
    %c0_i32_0 = arith.constant 0 : i32
    return %arg0, %c0_i32 : i32, i32
  }
  func.func @transform_1(%arg0: i32) -> (i32, i32, i32) {
    %c0_i32 = arith.constant 0 : i32
    %c0_i32_0 = arith.constant 0 : i32
    %c0_i32_1 = arith.constant 0 : i32
    %c0_i32_2 = arith.constant 0 : i32
    return %c0_i32, %c0_i32_0, %c0_i32_1 : i32, i32, i32
  }
  func.func @transform_2(%arg0: i32) -> (i32, i32, i32) {
    %c0_i32 = arith.constant 0 : i32
    %c0_i32_0 = arith.constant 0 : i32
    %c0_i32_1 = arith.constant 0 : i32
    %c0_i32_2 = arith.constant 0 : i32
    return %c0_i32, %c0_i32_0, %c0_i32_1 : i32, i32, i32
  }
  func.func @transform_3(%arg0: i32) -> (i32, i32) {
    %c0_i32 = arith.constant 0 : i32
    %c0_i32_0 = arith.constant 0 : i32
    return %arg0, %c0_i32 : i32, i32
  }
}

</mosaic_0001>

<bundles_post_ra>
// kernel: tpu_custom_call.1
= control target key start
LH: loop header
LB: loop body
LE: loop exit
PB: predicated region body
PF: predicated region fallthrough
CT: control target
= control target key end

     0   :  { %8 = vsyncpa [#allocation3], 0  ;;  %s1031_s0 = inlined_call_operand.hbm [shape: f32[16,128], index: 0, kind: input, shape index: {}]   ;;  %s1032_s1 = inlined_call_operand.hbm [shape: f32[2,128,128], index: 1, kind: input, shape index: {}]   ;;  %s1033_s2 = inlined_call_operand.vmem [shape: f32[2,1,128], index: 2, kind: input, shape index: {}]   ;;  %s1034_s3 = inlined_call_operand.hbm [shape: f32[16,128], index: 3, kind: output, shape index: {}]  }
   0x1   :  { %10 = vsyncpa [#allocation3 + $0x1], 0 }
   0x2   :  { %11 = vsyncpa [#allocation6], 0 }
   0x3   :  { %12 = vsyncpa [#allocation4], 0 }
   0x4   :  { %14 = vsyncpa [#allocation4 + $0x1], 0  ;;  %s824_s12 = smov 0   ;;  %s826_s13 = smov 0  }
   0x5   :  { %s828_s14 = smov 0   ;;  %s830_s15 = smov 0  }
   0x6 LB: > { %s845_s16 = sadd.s32 4294967295, %s795_s15   ;;  %s491_s17 = sadd.s32 4294967294, %s795_s15   ;;  %s795_s15 = sphi %s830_s15, %s1056_s15   ;;  %s791_s14 = sphi %s828_s14, %s1055_s14   ;;  %s787_s13 = sphi %s826_s13, %s1054_s13   ;;  %s783_s12 = sphi %s824_s12, %s1053_s12  }
   0x7   : > { %p40_p0 = scmp.ne.s32.totalorder %s787_s13, %s783_s12  ;;  %p1035_p1 = scmp.eq.s32.totalorder %s845_s16, 0 }
   0x8   : > { %p112_p3 = scmp.eq.s32.totalorder %s491_s17, 1  ;;  %p492_p5 = scmp.ge.s32.totalorder %s795_s15, 1 }
   0x9   : > { %p854_p4 = por %p1035_p1, %p40_p0  ;;  %p119_p7 = scmp.lt.s32.totalorder %s795_s15, 3 }
   0xa   : > { %p859_p6 = por %p112_p3, %p40_p0  ;;  %s797_s21 = smov [#allocation5]  }
   0xb   : > { %s1039_s18 = scalar_select %p854_p4, 1, 0 }
   0xc   : > { %s1040_s19 = scalar_select %p859_p6, 1, 0 }
   0xd   : > { %p864_p8 = pnand %p492_p5, %p119_p7  ;;  %s131_s22 = sshll.u32 %s797_s21, 4  ;;  %s132_s22 = int_to_ptr.vmem [resolvable:$true] %s131_s22 }
   0xe   : > { %s878_s24 = sadd.s32 1, %s795_s15   ;;  %s27_s25 = sadd.s32 1, %s791_s14 }
   0xf   : > { %s1041_s20 = scalar_select %p864_p8, 1, 0 }
  0x10   : > { %p620_p9 = pneg %p864_p8  ;;  %s24_s26 = ssub.s32 %s795_s15, %s878_s24 }
  0x11   : > { %s684_s27 = scalar_lea.vmem %s132_s22, 4096  ;;  %p692_p5 = scmp.lt.s32.totalorder %s132_s22, %s132_s22 }
  0x12   : > { %p873_p11 = pnand %p620_p9, %p1035_p1  ;;  %p685_p13 = scmp.ne.s32.totalorder %s132_s22, %s684_s27 }
  0x13   : > { %p693_p7 = scmp.lt.s32.totalorder %s684_s27, %s684_s27 }
  0x14   : > { %p675_p12 = pneg %p873_p11 }
  0x15   : > { %p694_p10 = por %p693_p7, %p692_p5 }
  0x16   : > { %p687_p0 = pnand %p685_p13, %p675_p12 }
  0x18   : > { %p688_p3 = pneg %p687_p0 }
  0x1a   : > { %p695_p2 = pnand %p694_p10, %p688_p3 }
  0x1c   : > { %698 = shalt.err (!%p695_p2)
}
  0x1d   : > { %s798_s28 = smov 128   ;;  %s799_s29 = smov 8  }
  0x1e   : > { %623 = dma.hbm_to_vmem [thread:$0]  (!%p873_p11), %s1032_s1, 4096, %s132_s22, [#allocation6], %s798_s28, %s798_s28, %s799_s29  }
  0x1f   : > { %p25_p9 = scmp.eq.s32.totalorder %s24_s26, 0  ;;  %p34_p12 = scmp.ne.s32.totalorder %s791_s14, %s787_s13 }
  0x20   : > { %p35_p10 = scmp.eq.s32.totalorder %s795_s15, 0  ;;  %p633_p2 = scmp.lt.s32.totalorder %s795_s15, 2 }
  0x21   : > { %s895_s5 = scalar_select %p25_p9, %s791_s14, %s27_s25  }
  0x22   : > { %p36_p13 = por %p35_p10, %p34_p12  ;;  %p1043_p0 = scmp.eq.s32.totalorder %s845_s16, 1 }
  0x23   : > { %s148_s7 = sand.u32 1, %s791_s14   ;;  %s496_s8 = sshll.u32 %s795_s15, 7 }
  0x24   : > { %p899_p3 = por %p1043_p0, %p34_p12  ;;  %s495_s9 = sshll.u32 %s148_s7, 3 }
  0x25   : > { %s908_s17 = scalar_lea.hbm %s1031_s0, %s496_s8  ;;  %s152_s21 = scalar_lea.vmem [#allocation2], %s495_s9 }
  0x26   : > { %s1044_s6 = scalar_select %p899_p3, 1, 0 }
  0x27   : > { %s159_s22 = sshll.u32 %s152_s21, 4  ;;  %p910_p11 = pnand %p633_p2, %p36_p13  ;;  %s160_s22 = int_to_ptr.vmem [resolvable:$true] %s159_s22 }
  0x28   : > { %s149_s25 = scalar_lea.sflag [#allocation3], %s148_s7  ;;  %s699_s26 = scalar_lea.hbm %s908_s17, 128 }
  0x29   : > { %p700_p5 = scmp.ne.s32.totalorder %s908_s17, %s699_s26  ;;  %p701_p7 = pneg %p910_p11 }
  0x2a   : > { %s704_s29 = scalar_lea.hbm %s1031_s0, 256  ;;  %p705_p10 = scmp.lt.s32.totalorder %s908_s17, %s1031_s0 }
  0x2b   : > { %p702_p9 = pnand %p701_p7, %p700_p5  ;;  %p706_p2 = scmp.lt.s32.totalorder %s704_s29, %s699_s26 }
  0x2d   : > { %p703_p12 = pneg %p702_p9  ;;  %p707_p13 = por %p706_p2, %p705_p10 }
  0x2f   : > { %p708_p0 = pnand %p707_p13, %p703_p12 }
  0x31   : > { %711 = shalt.err (!%p708_p0)
}
  0x32   : > { %s712_s8 = scalar_lea.vmem %s160_s22, 128  ;;  %s800_s7 = smov [#allocation2]  }
  0x33   : > { %p713_p1 = scmp.ne.s32.totalorder %s160_s22, %s712_s8  ;;  %s717_s9 = sshll.u32 %s800_s7, 4  ;;  %s718_s9 = int_to_ptr.vmem [resolvable:$false] %s717_s9 }
  0x34   : > { %s719_s10 = scalar_lea.vmem %s718_s9, 256  ;;  %p720_p5 = scmp.lt.s32.totalorder %s160_s22, %s718_s9 }
  0x35   : > { %p715_p6 = pnand %p713_p1, %p701_p7  ;;  %p721_p9 = scmp.lt.s32.totalorder %s719_s10, %s712_s8 }
  0x37   : > { %p716_p3 = pneg %p715_p6  ;;  %p722_p4 = por %p721_p9, %p720_p5 }
  0x39   : > { %p723_p8 = pnand %p722_p4, %p716_p3 }
  0x3b   : > { %726 = shalt.err (!%p723_p8)
}
  0x3c   : > { %627 = dma.hbm_to_vmem [thread:$0]  (!%p910_p11), %s908_s17, 128, %s160_s22, %s149_s25  }
  0x3d   : > { %p1046_p12 = scmp.ne.s32.totalorder %s1041_s20, 0 }
  0x3e   : > { %s931_s11 = sand.u32 (!%p1046_p12), 1, %s787_s13   ;;  %p1047_p1 = scmp.ne.s32.totalorder (!%p1046_p12), %s1039_s18, 0 }
  0x3f   : > { %168 = sbr.rel (%p1046_p12) target bundleno = 515 (0x203), region = 32  ;;  %s498_s21 = sshll.u32 (!%p1046_p12), %s931_s11, 3 }
  0x40   : > { %s171_s26 = scalar_lea.sflag (!%p1046_p12), [#allocation3], %s931_s11  ;;  %s937_s27 = scalar_lea.vmem (!%p1046_p12), [#allocation2], %s498_s21 }
  0x44   : > { %770 = dma.done.wait (%p1047_p1), %s171_s26, 128  }
  0x45   : > { %772 = vsyncadd (%p1047_p1), %s171_s26, 4294967168  ;;  %p1048_p4 = scmp.eq.s32.totalorder %s845_s16, 0 }
  0x47   : > { %774 = dma.done.wait (%p1048_p4), [#allocation6], 4096   ;;  %p1049_p6 = pmov %p1048_p4 }
  0x48   : > { %v801_v0 = vmov 0.0   ;;  %vm802_vm0 = vmmov 0   ;;  %v217_v1 = vld [vmem:[#allocation5 + $0x78] sm:$0xff]  ;;  %v216_v2 = vld [vmem:[#allocation5 + $0x70] sm:$0xff]  ;;  %v215_v3 = vld [vmem:[#allocation5 + $0x68] sm:$0xff]  ;;  %s505_s23 = sshll.u32 %s845_s16, 7 }
  0x49   : > { %776 = vsyncadd (%p1049_p6), [#allocation6], 4294963200  ;;  %542 = vmatprep.subr.mxu0 %v801_v0  ;;  %574 = vmatprep.mubr.msk.f32.mxu0 %vm802_vm0, %v801_v0  ;;  %v214_v4 = vld [vmem:[#allocation5 + $0x60] sm:$0xff]  ;;  %v314_v5 = vld [vmem:[#allocation5 + $0xf8] sm:$0xff]  ;;  %s200_s25 = scalar_lea.vmem [#allocation7], %s498_s21  ;;  %s994_s4 = scalar_lea.hbm %s1034_s3, %s505_s23 }
  0x4a   : > { %577 = vmatprep.subr.mxu1 %v801_v0  ;;  %609 = vmatprep.mubr.msk.f32.mxu1 %vm802_vm0, %v801_v0  ;;  %v213_v6 = vld [vmem:[#allocation5 + $0x58] sm:$0xff]  ;;  %v313_v7 = vld [vmem:[#allocation5 + $0xf0] sm:$0xff]  ;;  %v312_v8 = vld [vmem:[#allocation5 + $0xe8] sm:$0xff]  ;;  %s411_s28 = sshll.u32 %s200_s25, 4  ;;  %s398_s8 = scalar_lea.sflag [#allocation4], %s931_s11  ;;  %s412_s28 = int_to_ptr.vmem [resolvable:$true] %s411_s28 }
  0x4b   : > { %543 = vmatpush3.msra.mxu0 %v217_v1  ;;  %578 = vmatpush3.msra.mxu1 %v314_v5  ;;  %v212_v9 = vld [vmem:[#allocation5 + $0x50] sm:$0xff]  ;;  %v311_v10 = vld [vmem:[#allocation5 + $0xe0] sm:$0xff]  ;;  %v211_v11 = vld [vmem:[#allocation5 + $0x48] sm:$0xff]  ;;  %s727_s7 = scalar_lea.vmem %s412_s28, 128  ;;  %p1050_p3 = scmp.ne.s32.totalorder %s1044_s6, 0 }
  0x4c   : > { %544 = vmatprep.subr.mxu0 %v801_v0  ;;  %579 = vmatprep.subr.mxu1 %v801_v0  ;;  %v310_v12 = vld [vmem:[#allocation5 + $0xd8] sm:$0xff]  ;;  %v210_v13 = vld [vmem:[#allocation5 + $0x40] sm:$0xff]  ;;  %v309_v14 = vld [vmem:[#allocation5 + $0xd0] sm:$0xff]  ;;  %p728_p8 = scmp.ne.s32.totalorder %s412_s28, %s727_s7  ;;  %s803_s16 = smov [#allocation7]  }
  0x4d   : > { %545 = vmatpush3.msra.mxu0 %v216_v2  ;;  %580 = vmatpush3.msra.mxu1 %v313_v7  ;;  %v209_v15 = vld [vmem:[#allocation5 + $0x38] sm:$0xff]  ;;  %v308_v16 = vld [vmem:[#allocation5 + $0xc8] sm:$0xff]  ;;  %v208_v17 = vld [vmem:[#allocation5 + $0x30] sm:$0xff]  ;;  %s731_s9 = sshll.u32 %s803_s16, 4  ;;  %s732_s9 = int_to_ptr.vmem [resolvable:$false] %s731_s9 }
  0x4e   : > { %546 = vmatprep.subr.mxu0 %v801_v0  ;;  %581 = vmatprep.subr.mxu1 %v801_v0  ;;  %v307_v18 = vld [vmem:[#allocation5 + $0xc0] sm:$0xff]  ;;  %v207_v19 = vld [vmem:[#allocation5 + $0x28] sm:$0xff]  ;;  %v306_v20 = vld [vmem:[#allocation5 + $0xb8] sm:$0xff]  ;;  %p729_p11 = pnand %p728_p8, %p1050_p3  ;;  %s733_s10 = scalar_lea.vmem %s732_s9, 256 }
  0x4f   : > { %547 = vmatpush3.msra.mxu0 %v215_v3  ;;  %582 = vmatpush3.msra.mxu1 %v312_v8  ;;  %v206_v21 = vld [vmem:[#allocation5 + $0x20] sm:$0xff]  ;;  %v305_v22 = vld [vmem:[#allocation5 + $0xb0] sm:$0xff]  ;;  %v205_v23 = vld [vmem:[#allocation5 + $0x18] sm:$0xff]  ;;  %p734_p10 = scmp.lt.s32.totalorder %s412_s28, %s732_s9  ;;  %p735_p2 = scmp.lt.s32.totalorder %s733_s10, %s727_s7 }
  0x50   : > { %548 = vmatprep.subr.mxu0 %v801_v0  ;;  %583 = vmatprep.subr.mxu1 %v801_v0  ;;  %v304_v24 = vld [vmem:[#allocation5 + $0xa8] sm:$0xff]  ;;  %v204_v25 = vld [vmem:[#allocation5 + $0x10] sm:$0xff]  ;;  %v303_v26 = vld [vmem:[#allocation5 + $0xa0] sm:$0xff]  ;;  %p730_p7 = pneg %p729_p11 }
  0x51   : > { %549 = vmatpush3.msra.mxu0 %v214_v4  ;;  %584 = vmatpush3.msra.mxu1 %v311_v10  ;;  %v203_v27 = vld [vmem:[#allocation5 + $0x8] sm:$0xff]  ;;  %v302_v28 = vld [vmem:[#allocation5 + $0x98] sm:$0xff]  ;;  %v202_v29 = vld [vmem:[#allocation5] sm:$0xff]  ;;  %p736_p13 = por %p735_p2, %p734_p10 }
  0x52   : > { %550 = vmatprep.subr.mxu0 %v801_v0  ;;  %585 = vmatprep.subr.mxu1 %v801_v0  ;;  %v201_v30 = vld [vmem:[%s937_s27] sm:$0xff]  ;;  %v300_v32 = vld [vmem:[#allocation5 + $0x88] sm:$0xff]  ;;  %v299_v33 = vld [vmem:[#allocation5 + $0x80] sm:$0xff] }
  0x53   : > { %551 = vmatpush3.msra.mxu0 %v213_v6  ;;  %586 = vmatpush3.msra.mxu1 %v310_v12  ;;  %v301_v31 = vld [vmem:[#allocation5 + $0x90] sm:$0xff]  ;;  %p737_p0 = pnand %p736_p13, %p730_p7 }
  0x54   : > { %552 = vmatprep.subr.mxu0 %v801_v0  ;;  %587 = vmatprep.subr.mxu1 %v801_v0  ;;  %v501_v34 = vld [vmem:[%s1033_s2] ss:$0 sm:$0xff]  ;;  %v503_v40 = vld [vmem:[%s1033_s2 + $0x1] ss:$0 sm:$0xff] }
  0x55   : > { %553 = vmatpush3.msra.mxu0 %v212_v9  ;;  %588 = vmatpush3.msra.mxu1 %v309_v14 }
  0x56   : > { %554 = vmatprep.subr.mxu0 %v801_v0  ;;  %589 = vmatprep.subr.mxu1 %v801_v0 }
  0x57   : > { %555 = vmatpush3.msra.mxu0 %v211_v11  ;;  %590 = vmatpush3.msra.mxu1 %v308_v16 }
  0x58   : > { %556 = vmatprep.subr.mxu0 %v801_v0  ;;  %591 = vmatprep.subr.mxu1 %v801_v0 }
  0x59   : > { %557 = vmatpush3.msra.mxu0 %v210_v13  ;;  %592 = vmatpush3.msra.mxu1 %v307_v18 }
  0x5a   : > { %558 = vmatprep.subr.mxu0 %v801_v0  ;;  %593 = vmatprep.subr.mxu1 %v801_v0 }
  0x5b   : > { %559 = vmatpush3.msra.mxu0 %v209_v15  ;;  %594 = vmatpush3.msra.mxu1 %v306_v20 }
  0x5c   : > { %560 = vmatprep.subr.mxu0 %v801_v0  ;;  %595 = vmatprep.subr.mxu1 %v801_v0 }
  0x5d   : > { %561 = vmatpush3.msra.mxu0 %v208_v17  ;;  %596 = vmatpush3.msra.mxu1 %v305_v22 }
  0x5e   : > { %562 = vmatprep.subr.mxu0 %v801_v0  ;;  %597 = vmatprep.subr.mxu1 %v801_v0 }
  0x5f   : > { %563 = vmatpush3.msra.mxu0 %v207_v19  ;;  %598 = vmatpush3.msra.mxu1 %v304_v24 }
  0x60   : > { %564 = vmatprep.subr.mxu0 %v801_v0  ;;  %599 = vmatprep.subr.mxu1 %v801_v0 }
  0x61   : > { %565 = vmatpush3.msra.mxu0 %v206_v21  ;;  %600 = vmatpush3.msra.mxu1 %v303_v26 }
  0x62   : > { %566 = vmatprep.subr.mxu0 %v801_v0  ;;  %601 = vmatprep.subr.mxu1 %v801_v0 }
  0x63   : > { %567 = vmatpush3.msra.mxu0 %v205_v23  ;;  %602 = vmatpush3.msra.mxu1 %v302_v28 }
  0x64   : > { %568 = vmatprep.subr.mxu0 %v801_v0  ;;  %603 = vmatprep.subr.mxu1 %v801_v0 }
  0x65   : > { %569 = vmatpush3.msra.mxu0 %v204_v25  ;;  %604 = vmatpush3.msra.mxu1 %v301_v31 }
  0x66   : > { %570 = vmatprep.subr.mxu0 %v801_v0  ;;  %605 = vmatprep.subr.mxu1 %v801_v0 }
  0x67   : > { %571 = vmatpush3.msra.mxu0 %v203_v27  ;;  %606 = vmatpush3.msra.mxu1 %v300_v32 }
  0x68   : > { %572 = vmatprep.subr.mxu0 %v801_v0  ;;  %607 = vmatprep.subr.mxu1 %v801_v0 }
  0x69   : > { %573 = vmatpush3.msra.mxu0 %v202_v29  ;;  %608 = vmatpush3.msra.mxu1 %v299_v33 }
  0x6a   : > { %575 = vmatmul.mubr.f32.vlgmr.msra.gmra.mxu0 %v201_v30 }
 0x12a   : > { %v291_v35 = vpop.f32.mrf.mxu0 }
 0x12b   : > { %v292_v36 = vadd.f32 %v501_v34, %v291_v35 }
 0x12c   : > { %v576_v37 = vpop.f32.mrf.mxu0 }
 0x12d   : > { %v296_v38 = vmul.f32 0.01, %v292_v36  ;;  %vm295_vm1 = vcmp.gt.f32.partialorder %v292_v36, 0.0 }
 0x12f   : > { %v297_v39 = vsel %vm295_vm1, %v292_v36, %v296_v38 }
 0x130   : > { %610 = vmatmul.mubr.f32.vlgmr.msra.gmra.mxu1 %v297_v39 }
 0x1f0   : > { %v389_v41 = vpop.f32.mrf.mxu1 }
 0x1f1   : > { %v390_v42 = vadd.f32 %v503_v40, %v389_v41 }
 0x1f2   : > { %v611_v43 = vpop.f32.mrf.mxu1 }
 0x1f3   : > { %vm393_vm2 = vcmp.gt.f32.partialorder %v390_v42, 0.0  ;;  %v394_v44 = vmul.f32 0.01, %v390_v42 }
 0x1f5   : > { %v395_v45 = vsel %vm393_vm2, %v390_v42, %v394_v44 }
 0x1f6   : > { %396 = vst [vmem:[%s200_s25] sm:$0xff] %v395_v45 }
 0x1f7   : > { %740 = shalt.err (!%p737_p0)
}
 0x1f8   : > { %s741_s21 = scalar_lea.hbm %s994_s4, 128  ;;  %s745_s27 = scalar_lea.hbm %s1034_s3, 256 }
 0x1f9   : > { %p742_p5 = scmp.ne.s32.totalorder %s994_s4, %s741_s21  ;;  %p746_p1 = scmp.lt.s32.totalorder %s994_s4, %s1034_s3 }
 0x1fa   : > { %p747_p4 = scmp.lt.s32.totalorder %s745_s27, %s741_s21 }
 0x1fb   : > { %p743_p9 = pnand %p742_p5, %p1050_p3 }
 0x1fc   : > { %p748_p6 = por %p747_p4, %p746_p1 }
 0x1fd   : > { %p744_p12 = pneg %p743_p9 }
 0x1ff   : > { %p749_p8 = pnand %p748_p6, %p744_p12 }
 0x201   : > { %752 = shalt.err (!%p749_p8)
}
 0x202   : > { %618 = dma.vmem_to_hbm [thread:$0]  (%p1050_p3), %s412_s28, 128, %s994_s4, %s398_s8  }
 0x203 PF: > { %s423_s17 = sand.u32 1, %s783_s12   ;;  %p1051_p11 = scmp.ne.s32.totalorder %s1040_s19, 0 }
 0x204   : > { %p1052_p7 = scmp.ge.s32.totalorder %s795_s15, 2  ;;  %s424_s22 = scalar_lea.sflag [#allocation4], %s423_s17 }
 0x206   : > { %p629_p10 = pnand %p1052_p7, %p1051_p11 }
 0x208   : > { %p630_p2 = pneg %p629_p10 }
 0x20a   : > { %778 = dma.done.wait (%p630_p2), %s424_s22, 128  }
 0x20b   : > { %780 = vsyncadd (%p630_p2), %s424_s22, 4294967168  ;;  %p17_p13 = scmp.ge.s32.totalorder %s878_s24, 4   ;;  %s1053_s12 = smov %s787_s13 }
 0x20c   : > { %s1054_s13 = smov %s791_s14  ;;  %s1055_s14 = smov %s895_s5 }
 0x20d   : > { %s1056_s15 = smov %s878_s24  ;;  %19 = sbr.rel (!%p17_p13) target bundleno = 6 (0x6), region = 83 }
 0x212   :  { %429 = vsyncpa [#allocation3], 1 }
 0x213   :  { %431 = vsyncpa [#allocation3 + $0x1], 1 }
 0x214   :  { %432 = vsyncpa [#allocation6], 1 }
 0x215   :  { %433 = vsyncpa [#allocation4], 1 }
 0x216   :  { %435 = vsyncpa [#allocation4 + $0x1], 1 }

// kernel: tpu_custom_call.1
= control target key start
LH: loop header
LB: loop body
LE: loop exit
PB: predicated region body
PF: predicated region fallthrough
CT: control target
= control target key end

     0   :  { %8 = vsyncpa [#allocation3], 0  ;;  %s1031_s0 = inlined_call_operand.hbm [shape: f32[16,128], index: 0, kind: input, shape index: {}]   ;;  %s1032_s1 = inlined_call_operand.hbm [shape: f32[2,128,128], index: 1, kind: input, shape index: {}]   ;;  %s1033_s2 = inlined_call_operand.vmem [shape: f32[2,1,128], index: 2, kind: input, shape index: {}]   ;;  %s1034_s3 = inlined_call_operand.hbm [shape: f32[16,128], index: 3, kind: output, shape index: {}]  }
   0x1   :  { %10 = vsyncpa [#allocation3 + $0x1], 0 }
   0x2   :  { %11 = vsyncpa [#allocation6], 0 }
   0x3   :  { %12 = vsyncpa [#allocation4], 0 }
   0x4   :  { %14 = vsyncpa [#allocation4 + $0x1], 0  ;;  %s824_s12 = smov 0   ;;  %s826_s13 = smov 0  }
   0x5   :  { %s828_s14 = smov 0   ;;  %s830_s15 = smov 0  }
   0x6 LB: > { %s845_s16 = sadd.s32 4294967295, %s795_s15   ;;  %s491_s17 = sadd.s32 4294967294, %s795_s15   ;;  %s795_s15 = sphi %s830_s15, %s1056_s15   ;;  %s791_s14 = sphi %s828_s14, %s1055_s14   ;;  %s787_s13 = sphi %s826_s13, %s1054_s13   ;;  %s783_s12 = sphi %s824_s12, %s1053_s12  }
   0x7   : > { %p40_p0 = scmp.ne.s32.totalorder %s787_s13, %s783_s12  ;;  %p1035_p1 = scmp.eq.s32.totalorder %s845_s16, 0 }
   0x8   : > { %p112_p3 = scmp.eq.s32.totalorder %s491_s17, 1  ;;  %p492_p5 = scmp.ge.s32.totalorder %s795_s15, 1 }
   0x9   : > { %p854_p4 = por %p1035_p1, %p40_p0  ;;  %p119_p7 = scmp.lt.s32.totalorder %s795_s15, 3 }
   0xa   : > { %p859_p6 = por %p112_p3, %p40_p0  ;;  %s797_s21 = smov [#allocation5]  }
   0xb   : > { %s1039_s18 = scalar_select %p854_p4, 1, 0 }
   0xc   : > { %s1040_s19 = scalar_select %p859_p6, 1, 0 }
   0xd   : > { %p864_p8 = pnand %p492_p5, %p119_p7  ;;  %s131_s22 = sshll.u32 %s797_s21, 4  ;;  %s132_s22 = int_to_ptr.vmem [resolvable:$true] %s131_s22 }
   0xe   : > { %s878_s24 = sadd.s32 1, %s795_s15   ;;  %s27_s25 = sadd.s32 1, %s791_s14 }
   0xf   : > { %s1041_s20 = scalar_select %p864_p8, 1, 0 }
  0x10   : > { %p620_p9 = pneg %p864_p8  ;;  %s24_s26 = ssub.s32 %s795_s15, %s878_s24 }
  0x11   : > { %s684_s27 = scalar_lea.vmem %s132_s22, 4096  ;;  %p692_p5 = scmp.lt.s32.totalorder %s132_s22, %s132_s22 }
  0x12   : > { %p873_p11 = pnand %p620_p9, %p1035_p1  ;;  %p685_p13 = scmp.ne.s32.totalorder %s132_s22, %s684_s27 }
  0x13   : > { %p693_p7 = scmp.lt.s32.totalorder %s684_s27, %s684_s27 }
  0x14   : > { %p675_p12 = pneg %p873_p11 }
  0x15   : > { %p694_p10 = por %p693_p7, %p692_p5 }
  0x16   : > { %p687_p0 = pnand %p685_p13, %p675_p12 }
  0x18   : > { %p688_p3 = pneg %p687_p0 }
  0x1a   : > { %p695_p2 = pnand %p694_p10, %p688_p3 }
  0x1c   : > { %698 = shalt.err (!%p695_p2)
}
  0x1d   : > { %s798_s28 = smov 128   ;;  %s799_s29 = smov 8  }
  0x1e   : > { %623 = dma.hbm_to_vmem [thread:$0]  (!%p873_p11), %s1032_s1, 4096, %s132_s22, [#allocation6], %s798_s28, %s798_s28, %s799_s29  }
  0x1f   : > { %p25_p9 = scmp.eq.s32.totalorder %s24_s26, 0  ;;  %p34_p12 = scmp.ne.s32.totalorder %s791_s14, %s787_s13 }
  0x20   : > { %p35_p10 = scmp.eq.s32.totalorder %s795_s15, 0  ;;  %p633_p2 = scmp.lt.s32.totalorder %s795_s15, 2 }
  0x21   : > { %s895_s5 = scalar_select %p25_p9, %s791_s14, %s27_s25  }
  0x22   : > { %p36_p13 = por %p35_p10, %p34_p12  ;;  %p1043_p0 = scmp.eq.s32.totalorder %s845_s16, 1 }
  0x23   : > { %s148_s7 = sand.u32 1, %s791_s14   ;;  %s496_s8 = sshll.u32 %s795_s15, 7 }
  0x24   : > { %p899_p3 = por %p1043_p0, %p34_p12  ;;  %s495_s9 = sshll.u32 %s148_s7, 3 }
  0x25   : > { %s908_s17 = scalar_lea.hbm %s1031_s0, %s496_s8  ;;  %s152_s21 = scalar_lea.vmem [#allocation2], %s495_s9 }
  0x26   : > { %s1044_s6 = scalar_select %p899_p3, 1, 0 }
  0x27   : > { %s159_s22 = sshll.u32 %s152_s21, 4  ;;  %p910_p11 = pnand %p633_p2, %p36_p13  ;;  %s160_s22 = int_to_ptr.vmem [resolvable:$true] %s159_s22 }
  0x28   : > { %s149_s25 = scalar_lea.sflag [#allocation3], %s148_s7  ;;  %s699_s26 = scalar_lea.hbm %s908_s17, 128 }
  0x29   : > { %p700_p5 = scmp.ne.s32.totalorder %s908_s17, %s699_s26  ;;  %p701_p7 = pneg %p910_p11 }
  0x2a   : > { %s704_s29 = scalar_lea.hbm %s1031_s0, 256  ;;  %p705_p10 = scmp.lt.s32.totalorder %s908_s17, %s1031_s0 }
  0x2b   : > { %p702_p9 = pnand %p701_p7, %p700_p5  ;;  %p706_p2 = scmp.lt.s32.totalorder %s704_s29, %s699_s26 }
  0x2d   : > { %p703_p12 = pneg %p702_p9  ;;  %p707_p13 = por %p706_p2, %p705_p10 }
  0x2f   : > { %p708_p0 = pnand %p707_p13, %p703_p12 }
  0x31   : > { %711 = shalt.err (!%p708_p0)
}
  0x32   : > { %s712_s8 = scalar_lea.vmem %s160_s22, 128  ;;  %s800_s7 = smov [#allocation2]  }
  0x33   : > { %p713_p1 = scmp.ne.s32.totalorder %s160_s22, %s712_s8  ;;  %s717_s9 = sshll.u32 %s800_s7, 4  ;;  %s718_s9 = int_to_ptr.vmem [resolvable:$false] %s717_s9 }
  0x34   : > { %s719_s10 = scalar_lea.vmem %s718_s9, 256  ;;  %p720_p5 = scmp.lt.s32.totalorder %s160_s22, %s718_s9 }
  0x35   : > { %p715_p6 = pnand %p713_p1, %p701_p7  ;;  %p721_p9 = scmp.lt.s32.totalorder %s719_s10, %s712_s8 }
  0x37   : > { %p716_p3 = pneg %p715_p6  ;;  %p722_p4 = por %p721_p9, %p720_p5 }
  0x39   : > { %p723_p8 = pnand %p722_p4, %p716_p3 }
  0x3b   : > { %726 = shalt.err (!%p723_p8)
}
  0x3c   : > { %627 = dma.hbm_to_vmem [thread:$0]  (!%p910_p11), %s908_s17, 128, %s160_s22, %s149_s25  }
  0x3d   : > { %p1046_p12 = scmp.ne.s32.totalorder %s1041_s20, 0 }
  0x3e   : > { %s931_s11 = sand.u32 (!%p1046_p12), 1, %s787_s13   ;;  %p1047_p1 = scmp.ne.s32.totalorder (!%p1046_p12), %s1039_s18, 0 }
  0x3f   : > { %168 = sbr.rel (%p1046_p12) target bundleno = 515 (0x203), region = 32  ;;  %s498_s21 = sshll.u32 (!%p1046_p12), %s931_s11, 3 }
  0x40   : > { %s171_s26 = scalar_lea.sflag (!%p1046_p12), [#allocation3], %s931_s11  ;;  %s937_s27 = scalar_lea.vmem (!%p1046_p12), [#allocation2], %s498_s21 }
  0x44   : > { %770 = dma.done.wait (%p1047_p1), %s171_s26, 128  }
  0x45   : > { %772 = vsyncadd (%p1047_p1), %s171_s26, 4294967168  ;;  %p1048_p4 = scmp.eq.s32.totalorder %s845_s16, 0 }
  0x47   : > { %774 = dma.done.wait (%p1048_p4), [#allocation6], 4096   ;;  %p1049_p6 = pmov %p1048_p4 }
  0x48   : > { %v801_v0 = vmov 0.0   ;;  %vm802_vm0 = vmmov 0   ;;  %v217_v1 = vld [vmem:[#allocation5 + $0x78] sm:$0xff]  ;;  %v216_v2 = vld [vmem:[#allocation5 + $0x70] sm:$0xff]  ;;  %v215_v3 = vld [vmem:[#allocation5 + $0x68] sm:$0xff]  ;;  %s505_s23 = sshll.u32 %s845_s16, 7 }
  0x49   : > { %776 = vsyncadd (%p1049_p6), [#allocation6], 4294963200  ;;  %542 = vmatprep.subr.mxu0 %v801_v0  ;;  %574 = vmatprep.mubr.msk.f32.mxu0 %vm802_vm0, %v801_v0  ;;  %v214_v4 = vld [vmem:[#allocation5 + $0x60] sm:$0xff]  ;;  %v314_v5 = vld [vmem:[#allocation5 + $0xf8] sm:$0xff]  ;;  %s200_s25 = scalar_lea.vmem [#allocation7], %s498_s21  ;;  %s994_s4 = scalar_lea.hbm %s1034_s3, %s505_s23 }
  0x4a   : > { %577 = vmatprep.subr.mxu1 %v801_v0  ;;  %609 = vmatprep.mubr.msk.f32.mxu1 %vm802_vm0, %v801_v0  ;;  %v213_v6 = vld [vmem:[#allocation5 + $0x58] sm:$0xff]  ;;  %v313_v7 = vld [vmem:[#allocation5 + $0xf0] sm:$0xff]  ;;  %v312_v8 = vld [vmem:[#allocation5 + $0xe8] sm:$0xff]  ;;  %s411_s28 = sshll.u32 %s200_s25, 4  ;;  %s398_s8 = scalar_lea.sflag [#allocation4], %s931_s11  ;;  %s412_s28 = int_to_ptr.vmem [resolvable:$true] %s411_s28 }
  0x4b   : > { %543 = vmatpush3.msra.mxu0 %v217_v1  ;;  %578 = vmatpush3.msra.mxu1 %v314_v5  ;;  %v212_v9 = vld [vmem:[#allocation5 + $0x50] sm:$0xff]  ;;  %v311_v10 = vld [vmem:[#allocation5 + $0xe0] sm:$0xff]  ;;  %v211_v11 = vld [vmem:[#allocation5 + $0x48] sm:$0xff]  ;;  %s727_s7 = scalar_lea.vmem %s412_s28, 128  ;;  %p1050_p3 = scmp.ne.s32.totalorder %s1044_s6, 0 }
  0x4c   : > { %544 = vmatprep.subr.mxu0 %v801_v0  ;;  %579 = vmatprep.subr.mxu1 %v801_v0  ;;  %v310_v12 = vld [vmem:[#allocation5 + $0xd8] sm:$0xff]  ;;  %v210_v13 = vld [vmem:[#allocation5 + $0x40] sm:$0xff]  ;;  %v309_v14 = vld [vmem:[#allocation5 + $0xd0] sm:$0xff]  ;;  %p728_p8 = scmp.ne.s32.totalorder %s412_s28, %s727_s7  ;;  %s803_s16 = smov [#allocation7]  }
  0x4d   : > { %545 = vmatpush3.msra.mxu0 %v216_v2  ;;  %580 = vmatpush3.msra.mxu1 %v313_v7  ;;  %v209_v15 = vld [vmem:[#allocation5 + $0x38] sm:$0xff]  ;;  %v308_v16 = vld [vmem:[#allocation5 + $0xc8] sm:$0xff]  ;;  %v208_v17 = vld [vmem:[#allocation5 + $0x30] sm:$0xff]  ;;  %s731_s9 = sshll.u32 %s803_s16, 4  ;;  %s732_s9 = int_to_ptr.vmem [resolvable:$false] %s731_s9 }
  0x4e   : > { %546 = vmatprep.subr.mxu0 %v801_v0  ;;  %581 = vmatprep.subr.mxu1 %v801_v0  ;;  %v307_v18 = vld [vmem:[#allocation5 + $0xc0] sm:$0xff]  ;;  %v207_v19 = vld [vmem:[#allocation5 + $0x28] sm:$0xff]  ;;  %v306_v20 = vld [vmem:[#allocation5 + $0xb8] sm:$0xff]  ;;  %p729_p11 = pnand %p728_p8, %p1050_p3  ;;  %s733_s10 = scalar_lea.vmem %s732_s9, 256 }
  0x4f   : > { %547 = vmatpush3.msra.mxu0 %v215_v3  ;;  %582 = vmatpush3.msra.mxu1 %v312_v8  ;;  %v206_v21 = vld [vmem:[#allocation5 + $0x20] sm:$0xff]  ;;  %v305_v22 = vld [vmem:[#allocation5 + $0xb0] sm:$0xff]  ;;  %v205_v23 = vld [vmem:[#allocation5 + $0x18] sm:$0xff]  ;;  %p734_p10 = scmp.lt.s32.totalorder %s412_s28, %s732_s9  ;;  %p735_p2 = scmp.lt.s32.totalorder %s733_s10, %s727_s7 }
  0x50   : > { %548 = vmatprep.subr.mxu0 %v801_v0  ;;  %583 = vmatprep.subr.mxu1 %v801_v0  ;;  %v304_v24 = vld [vmem:[#allocation5 + $0xa8] sm:$0xff]  ;;  %v204_v25 = vld [vmem:[#allocation5 + $0x10] sm:$0xff]  ;;  %v303_v26 = vld [vmem:[#allocation5 + $0xa0] sm:$0xff]  ;;  %p730_p7 = pneg %p729_p11 }
  0x51   : > { %549 = vmatpush3.msra.mxu0 %v214_v4  ;;  %584 = vmatpush3.msra.mxu1 %v311_v10  ;;  %v203_v27 = vld [vmem:[#allocation5 + $0x8] sm:$0xff]  ;;  %v302_v28 = vld [vmem:[#allocation5 + $0x98] sm:$0xff]  ;;  %v202_v29 = vld [vmem:[#allocation5] sm:$0xff]  ;;  %p736_p13 = por %p735_p2, %p734_p10 }
  0x52   : > { %550 = vmatprep.subr.mxu0 %v801_v0  ;;  %585 = vmatprep.subr.mxu1 %v801_v0  ;;  %v201_v30 = vld [vmem:[%s937_s27] sm:$0xff]  ;;  %v300_v32 = vld [vmem:[#allocation5 + $0x88] sm:$0xff]  ;;  %v299_v33 = vld [vmem:[#allocation5 + $0x80] sm:$0xff] }
  0x53   : > { %551 = vmatpush3.msra.mxu0 %v213_v6  ;;  %586 = vmatpush3.msra.mxu1 %v310_v12  ;;  %v301_v31 = vld [vmem:[#allocation5 + $0x90] sm:$0xff]  ;;  %p737_p0 = pnand %p736_p13, %p730_p7 }
  0x54   : > { %552 = vmatprep.subr.mxu0 %v801_v0  ;;  %587 = vmatprep.subr.mxu1 %v801_v0  ;;  %v501_v34 = vld [vmem:[%s1033_s2] ss:$0 sm:$0xff]  ;;  %v503_v40 = vld [vmem:[%s1033_s2 + $0x1] ss:$0 sm:$0xff] }
  0x55   : > { %553 = vmatpush3.msra.mxu0 %v212_v9  ;;  %588 = vmatpush3.msra.mxu1 %v309_v14 }
  0x56   : > { %554 = vmatprep.subr.mxu0 %v801_v0  ;;  %589 = vmatprep.subr.mxu1 %v801_v0 }
  0x57   : > { %555 = vmatpush3.msra.mxu0 %v211_v11  ;;  %590 = vmatpush3.msra.mxu1 %v308_v16 }
  0x58   : > { %556 = vmatprep.subr.mxu0 %v801_v0  ;;  %591 = vmatprep.subr.mxu1 %v801_v0 }
  0x59   : > { %557 = vmatpush3.msra.mxu0 %v210_v13  ;;  %592 = vmatpush3.msra.mxu1 %v307_v18 }
  0x5a   : > { %558 = vmatprep.subr.mxu0 %v801_v0  ;;  %593 = vmatprep.subr.mxu1 %v801_v0 }
  0x5b   : > { %559 = vmatpush3.msra.mxu0 %v209_v15  ;;  %594 = vmatpush3.msra.mxu1 %v306_v20 }
  0x5c   : > { %560 = vmatprep.subr.mxu0 %v801_v0  ;;  %595 = vmatprep.subr.mxu1 %v801_v0 }
  0x5d   : > { %561 = vmatpush3.msra.mxu0 %v208_v17  ;;  %596 = vmatpush3.msra.mxu1 %v305_v22 }
  0x5e   : > { %562 = vmatprep.subr.mxu0 %v801_v0  ;;  %597 = vmatprep.subr.mxu1 %v801_v0 }
  0x5f   : > { %563 = vmatpush3.msra.mxu0 %v207_v19  ;;  %598 = vmatpush3.msra.mxu1 %v304_v24 }
  0x60   : > { %564 = vmatprep.subr.mxu0 %v801_v0  ;;  %599 = vmatprep.subr.mxu1 %v801_v0 }
  0x61   : > { %565 = vmatpush3.msra.mxu0 %v206_v21  ;;  %600 = vmatpush3.msra.mxu1 %v303_v26 }
  0x62   : > { %566 = vmatprep.subr.mxu0 %v801_v0  ;;  %601 = vmatprep.subr.mxu1 %v801_v0 }
  0x63   : > { %567 = vmatpush3.msra.mxu0 %v205_v23  ;;  %602 = vmatpush3.msra.mxu1 %v302_v28 }
  0x64   : > { %568 = vmatprep.subr.mxu0 %v801_v0  ;;  %603 = vmatprep.subr.mxu1 %v801_v0 }
  0x65   : > { %569 = vmatpush3.msra.mxu0 %v204_v25  ;;  %604 = vmatpush3.msra.mxu1 %v301_v31 }
  0x66   : > { %570 = vmatprep.subr.mxu0 %v801_v0  ;;  %605 = vmatprep.subr.mxu1 %v801_v0 }
  0x67   : > { %571 = vmatpush3.msra.mxu0 %v203_v27  ;;  %606 = vmatpush3.msra.mxu1 %v300_v32 }
  0x68   : > { %572 = vmatprep.subr.mxu0 %v801_v0  ;;  %607 = vmatprep.subr.mxu1 %v801_v0 }
  0x69   : > { %573 = vmatpush3.msra.mxu0 %v202_v29  ;;  %608 = vmatpush3.msra.mxu1 %v299_v33 }
  0x6a   : > { %575 = vmatmul.mubr.f32.vlgmr.msra.gmra.mxu0 %v201_v30 }
 0x12a   : > { %v291_v35 = vpop.f32.mrf.mxu0 }
 0x12b   : > { %v292_v36 = vadd.f32 %v501_v34, %v291_v35 }
 0x12c   : > { %v576_v37 = vpop.f32.mrf.mxu0 }
 0x12d   : > { %v296_v38 = vmul.f32 0.01, %v292_v36  ;;  %vm295_vm1 = vcmp.gt.f32.partialorder %v292_v36, 0.0 }
 0x12f   : > { %v297_v39 = vsel %vm295_vm1, %v292_v36, %v296_v38 }
 0x130   : > { %610 = vmatmul.mubr.f32.vlgmr.msra.gmra.mxu1 %v297_v39 }
 0x1f0   : > { %v389_v41 = vpop.f32.mrf.mxu1 }
 0x1f1   : > { %v390_v42 = vadd.f32 %v503_v40, %v389_v41 }
 0x1f2   : > { %v611_v43 = vpop.f32.mrf.mxu1 }
 0x1f3   : > { %vm393_vm2 = vcmp.gt.f32.partialorder %v390_v42, 0.0  ;;  %v394_v44 = vmul.f32 0.01, %v390_v42 }
 0x1f5   : > { %v395_v45 = vsel %vm393_vm2, %v390_v42, %v394_v44 }
 0x1f6   : > { %396 = vst [vmem:[%s200_s25] sm:$0xff] %v395_v45 }
 0x1f7   : > { %740 = shalt.err (!%p737_p0)
}
 0x1f8   : > { %s741_s21 = scalar_lea.hbm %s994_s4, 128  ;;  %s745_s27 = scalar_lea.hbm %s1034_s3, 256 }
 0x1f9   : > { %p742_p5 = scmp.ne.s32.totalorder %s994_s4, %s741_s21  ;;  %p746_p1 = scmp.lt.s32.totalorder %s994_s4, %s1034_s3 }
 0x1fa   : > { %p747_p4 = scmp.lt.s32.totalorder %s745_s27, %s741_s21 }
 0x1fb   : > { %p743_p9 = pnand %p742_p5, %p1050_p3 }
 0x1fc   : > { %p748_p6 = por %p747_p4, %p746_p1 }
 0x1fd   : > { %p744_p12 = pneg %p743_p9 }
 0x1ff   : > { %p749_p8 = pnand %p748_p6, %p744_p12 }
 0x201   : > { %752 = shalt.err (!%p749_p8)
}
 0x202   : > { %618 = dma.vmem_to_hbm [thread:$0]  (%p1050_p3), %s412_s28, 128, %s994_s4, %s398_s8  }
 0x203 PF: > { %s423_s17 = sand.u32 1, %s783_s12   ;;  %p1051_p11 = scmp.ne.s32.totalorder %s1040_s19, 0 }
 0x204   : > { %p1052_p7 = scmp.ge.s32.totalorder %s795_s15, 2  ;;  %s424_s22 = scalar_lea.sflag [#allocation4], %s423_s17 }
 0x206   : > { %p629_p10 = pnand %p1052_p7, %p1051_p11 }
 0x208   : > { %p630_p2 = pneg %p629_p10 }
 0x20a   : > { %778 = dma.done.wait (%p630_p2), %s424_s22, 128  }
 0x20b   : > { %780 = vsyncadd (%p630_p2), %s424_s22, 4294967168  ;;  %p17_p13 = scmp.ge.s32.totalorder %s878_s24, 4   ;;  %s1053_s12 = smov %s787_s13 }
 0x20c   : > { %s1054_s13 = smov %s791_s14  ;;  %s1055_s14 = smov %s895_s5 }
 0x20d   : > { %s1056_s15 = smov %s878_s24  ;;  %19 = sbr.rel (!%p17_p13) target bundleno = 6 (0x6), region = 83 }
 0x212   :  { %429 = vsyncpa [#allocation3], 1 }
 0x213   :  { %431 = vsyncpa [#allocation3 + $0x1], 1 }
 0x214   :  { %432 = vsyncpa [#allocation6], 1 }
 0x215   :  { %433 = vsyncpa [#allocation4], 1 }
 0x216   :  { %435 = vsyncpa [#allocation4 + $0x1], 1 }

</bundles_post_ra>
